<compile_context>
chip_gen: v5e
topology: v5e:2x2
jax: 0.10.0
libtpu: 0.0.40
codegen_flags: <defaults>
</compile_context>

<pallas_src>
import functools

import jax
import jax.numpy as jnp
from jax import lax
from jax.experimental import pallas as pl
from jax.experimental.pallas import tpu as pltpu

KH = KW = 4
STRIDE = 2
PAD = 1
BN_EPS = 1e-5


def _round_up(a: int, b: int) -> int:
    return (a + b - 1) // b * b


# -----------------------------------------------------------------------------
# Pass 1: per-parity transposed GEMM + bias + ReLU + partial BN statistics.
# -----------------------------------------------------------------------------
def _gemm_relu_stats_kernel(p_ref, w_ref, b_ref, y_ref, s_ref, *, r_valid, r_tile):
    # p_ref: (K, r_tile) bf16    w_ref: (C_out, K) bf16    b_ref: (C_out, 1) f32
    # y_ref: (C_out, r_tile) f32 (lane-dense)               s_ref: (C_out, 2) f32
    y = jnp.dot(w_ref[...], p_ref[...], preferred_element_type=jnp.float32)
    y = jnp.maximum(y + b_ref[...], 0.0)          # conv-transpose bias + ReLU
    y_ref[...] = y

    if r_valid % r_tile:                          # static: rows were zero-padded
        col = pl.program_id(1) * r_tile + lax.broadcasted_iota(jnp.int32, y.shape, 1)
        y = jnp.where(col < r_valid, y, 0.0)      # keep pad rows out of BN stats

    s_ref[:, 0:1] = jnp.sum(y, axis=1, keepdims=True)
    s_ref[:, 1:2] = jnp.sum(y * y, axis=1, keepdims=True)


# -----------------------------------------------------------------------------
# Pass 2: fused BatchNorm affine  y * scale + shift  (per output channel).
# -----------------------------------------------------------------------------
def _bn_affine_kernel(y_ref, scale_ref, shift_ref, o_ref):
    o_ref[...] = y_ref[...] * scale_ref[...] + shift_ref[...]


def upsample_block_forward(x, w, b, gamma, beta, *, r_tile_cap=2048):
    """ConvTranspose2d(4,2,1) -> ReLU -> BatchNorm2d (training batch stats).

    x: (N, C_in, H, W) f32, w: (C_in, C_out, 4, 4), b/gamma/beta: (C_out,).
    Returns (N, C_out, 2H, 2W) f32.
    """
    N, C_in, H, W = x.shape
    C_out = w.shape[1]
    K = 4 * C_in                                  # 2x2 taps per parity
    r = N * H * W                                 # rows per output parity
    r_tile = min(r_tile_cap, _round_up(r, 128))   # lane-aligned row tile
    r_pad = _round_up(r, r_tile)
    n_tiles = r_pad // r_tile
    grid = (4, n_tiles)                           # (parity, row tile)

    # ---- wrapper glue: per-parity 2x2 taps of the raw input (sub-pixel form) ----
    x_pad = jnp.pad(x, ((0, 0), (0, 0), (1, 1), (1, 1)))
    S = ((0, 1), (1, 2))                          # padded h/w tap offsets per parity
    p_list, w_list = [], []
    for ph in (0, 1):
        for pw in (0, 1):
            taps_x, taps_w = [], []
            for s in S[ph]:
                for t in S[pw]:
                    taps_x.append(x_pad[:, :, s:s + H, t:t + W])            # (N,C_in,H,W)
                    taps_w.append(w[:, :, ph + 3 - 2 * s, pw + 3 - 2 * t])  # (C_in,C_out)
            px = jnp.stack(taps_x, 0).transpose(0, 2, 1, 3, 4).reshape(K, r)
            p_list.append(px)
            wm = jnp.stack(taps_w, 0).transpose(2, 0, 1).reshape(C_out, K)
            w_list.append(wm)
    patches_t = jnp.stack(p_list, 0)              # (4, K, r), K-major, rows on lanes
    if r_pad != r:
        patches_t = jnp.pad(patches_t, ((0, 0), (0, 0), (0, r_pad - r)))
    patches_t = patches_t.astype(jnp.bfloat16)
    w_t = jnp.stack(w_list, 0).astype(jnp.bfloat16)          # (4, C_out, K)
    b2 = b.reshape(C_out, 1).astype(jnp.float32)

    # ---- pass 1: GEMM + bias + ReLU + partial BN stats (row-tiled, parallel) ----
    cost = pl.CostEstimate(
        flops=int(2 * 4 * C_out * K * r_pad),
        transcendentals=0,
        bytes_accessed=int(patches_t.size * 2 + w_t.size * 2
                           + 4 * C_out * r_pad * 4 + 4 * n_tiles * C_out * 2 * 4),
    )
    y_flat, stats = pl.pallas_call(
        functools.partial(_gemm_relu_stats_kernel, r_valid=r, r_tile=r_tile),
        grid=grid,
        in_specs=[
            pl.BlockSpec((None, K, r_tile), lambda p, t: (p, 0, t)),
            pl.BlockSpec((None, C_out, K), lambda p, t: (p, 0, 0)),
            pl.BlockSpec((C_out, 1), lambda p, t: (0, 0)),
        ],
        out_specs=[
            pl.BlockSpec((None, C_out, r_tile), lambda p, t: (p, 0, t)),
            pl.BlockSpec((None, None, C_out, 2), lambda p, t: (p, t, 0, 0)),
        ],
        out_shape=[
            jax.ShapeDtypeStruct((4, C_out, r_pad), jnp.float32),
            jax.ShapeDtypeStruct((4, n_tiles, C_out, 2), jnp.float32),
        ],
        compiler_params=pltpu.CompilerParams(
            dimension_semantics=("parallel", "parallel"),
            vmem_limit_bytes=32 * 1024 * 1024,
        ),
        cost_estimate=cost,
    )(patches_t, w_t, b2)

    # ---- tiny per-channel BN folding (GLOBAL stats over all N*OH*OW rows) ----
    count = 4.0 * r
    total = jnp.sum(stats[..., 0], axis=(0, 1))
    total_sq = jnp.sum(stats[..., 1], axis=(0, 1))
    mean = total / count
    var = jnp.maximum(total_sq / count - mean * mean, 0.0)   # biased variance
    scale = gamma.astype(jnp.float32) * lax.rsqrt(var + BN_EPS)
    shift = beta.astype(jnp.float32) - mean * scale

    # ---- pass 2: fused affine (normalize), same lane-dense tiling ----
    out_flat = pl.pallas_call(
        _bn_affine_kernel,
        grid=grid,
        in_specs=[
            pl.BlockSpec((None, C_out, r_tile), lambda p, t: (p, 0, t)),
            pl.BlockSpec((C_out, 1), lambda p, t: (0, 0)),
            pl.BlockSpec((C_out, 1), lambda p, t: (0, 0)),
        ],
        out_specs=pl.BlockSpec((None, C_out, r_tile), lambda p, t: (p, 0, t)),
        out_shape=jax.ShapeDtypeStruct((4, C_out, r_pad), jnp.float32),
        compiler_params=pltpu.CompilerParams(
            dimension_semantics=("parallel", "parallel"),
            vmem_limit_bytes=32 * 1024 * 1024,
        ),
    )(y_flat, scale.reshape(C_out, 1), shift.reshape(C_out, 1))

    # ---- wrapper glue: (parity, C_out, rows) -> NCHW pixel shuffle ----
    y = out_flat[:, :, :r].reshape(2, 2, C_out, N, H, W)
    return y.transpose(3, 2, 4, 0, 5, 1).reshape(N, C_out, 2 * H, 2 * W)


def _reference(x, w, b, gamma, beta):
    """Pure-JAX ConvTranspose2d(4,2,1) + ReLU + BatchNorm2d (train-mode stats)."""
    C_out = w.shape[1]
    k_oihw = jnp.transpose(w, (1, 0, 2, 3))[:, :, ::-1, ::-1]
    y = lax.conv_general_dilated(
        x, k_oihw,
        window_strides=(1, 1),
        padding=((KH - 1 - PAD,) * 2, (KW - 1 - PAD,) * 2),
        lhs_dilation=(STRIDE, STRIDE),
        dimension_numbers=("NCHW", "OIHW", "NCHW"),
        precision=lax.Precision.HIGHEST,
    ) + b.reshape(1, C_out, 1, 1)
    y = jnp.maximum(y, 0.0)
    mean = jnp.mean(y, axis=(0, 2, 3), keepdims=True)
    var = jnp.mean((y - mean) ** 2, axis=(0, 2, 3), keepdims=True)
    y = (y - mean) * lax.rsqrt(var + BN_EPS)
    return y * gamma.reshape(1, C_out, 1, 1) + beta.reshape(1, C_out, 1, 1)


if __name__ == "__main__":
    fwd = jax.jit(upsample_block_forward)

    # (N, C_in, C_out, H, W): toy shape + the three UpsampleBlocks of
    # ConvGenerator(num_channels=3, image_dim=64, noise_dim=100, num_features=4).
    configs = [
        (2, 4, 8, 16, 16),
        (2, 4, 32, 8, 8),     # conv1
        (2, 32, 16, 16, 16),  # conv2
        (2, 16, 8, 32, 32),   # conv3
    ]

    key = jax.random.PRNGKey(0)
    for (N, C_in, C_out, H, W) in configs:
        key, kx, kw, kb = jax.random.split(key, 4)
        x = jax.random.normal(kx, (N, C_in, H, W), dtype=jnp.float32)
        fan = C_in * KH * KW
        bound = 1.0 / (fan ** 0.5)
        w = jax.random.uniform(kw, (C_in, C_out, KH, KW), jnp.float32, -bound, bound)
        b = jax.random.uniform(kb, (C_out,), jnp.float32, -bound, bound)
        gamma = jnp.ones((C_out,), jnp.float32)   # fresh BatchNorm2d init
        beta = jnp.zeros((C_out,), jnp.float32)

        out = jax.block_until_ready(fwd(x, w, b, gamma, beta))
        assert out.shape == (N, C_out, 2 * H, 2 * W), out.shape

        # Tight check: same math on bf16-rounded operands (kernel feeds MXU bf16).
        xq = x.astype(jnp.bfloat16).astype(jnp.float32)
        wq = w.astype(jnp.bfloat16).astype(jnp.float32)
        ref_q = jax.block_until_ready(_reference(xq, wq, b, gamma, beta))
        err_q = float(jnp.max(jnp.abs(out - ref_q)))
        assert jnp.allclose(out, ref_q, atol=2e-3, rtol=2e-3), (err_q, (N, C_in, C_out, H, W))

        # Loose check vs. full-f32 reference (bounds bf16 quantization error).
        ref_f = jax.block_until_ready(_reference(x, w, b, gamma, beta))
        err_f = float(jnp.max(jnp.abs(out - ref_f)))
        assert jnp.allclose(out, ref_f, atol=5e-2, rtol=5e-2), (err_f, (N, C_in, C_out, H, W))

    print("KERNEL_OK")
</pallas_src>

<mosaic_0001>
module attributes {stable_mosaic.version = 11 : i64} {
  func.func @_gemm_relu_stats_kernel(%arg0: i32, %arg1: i32, %arg2: memref<1x16x512xbf16, #tpu.memory_space<vmem>>, %arg3: memref<1x8x16xbf16, #tpu.memory_space<vmem>>, %arg4: memref<8x1xf32, #tpu.memory_space<vmem>>, %arg5: memref<1x8x512xf32, #tpu.memory_space<vmem>>, %arg6: memref<1x1x8x2xf32, #tpu.memory_space<vmem>>) attributes {dimension_semantics = [#tpu.dimension_semantics<parallel>, #tpu.dimension_semantics<parallel>], iteration_bounds = array<i64: 4, 1>, scalar_prefetch = 0 : i64, scratch_operands = 0 : i64, tpu.core_type = #tpu.core_type<tc>, window_params = [{transform_indices = @transform_0, window_bounds = array<i64: 1, 16, 512>}, {transform_indices = @transform_1, window_bounds = array<i64: 1, 8, 16>}, {pipeline_mode = #tpu.pipeline_mode<synchronous>, transform_indices = @transform_2, window_bounds = array<i64: 8, 1>}, {transform_indices = @transform_3, window_bounds = array<i64: 1, 8, 512>}, {transform_indices = @transform_4, window_bounds = array<i64: 1, 1, 8, 2>}]} {
    %c0 = arith.constant 0 : index
    %c0_0 = arith.constant 0 : index
    %c0_1 = arith.constant 0 : index
    %0 = vector.load %arg3[%c0, %c0_0, %c0_1] : memref<1x8x16xbf16, #tpu.memory_space<vmem>>, vector<1x8x16xbf16>
    %1 = vector.shape_cast %0 : vector<1x8x16xbf16> to vector<8x16xbf16>
    %c0_2 = arith.constant 0 : index
    %c0_3 = arith.constant 0 : index
    %c0_4 = arith.constant 0 : index
    %2 = vector.load %arg2[%c0_2, %c0_3, %c0_4] : memref<1x16x512xbf16, #tpu.memory_space<vmem>>, vector<1x16x512xbf16>
    %3 = vector.shape_cast %2 : vector<1x16x512xbf16> to vector<16x512xbf16>
    %cst = arith.constant dense<0.000000e+00> : vector<8x512xf32>
    %4 = tpu.matmul %1, %3, %cst {dimension_numbers = #tpu.dot_dimension_numbers<[1], [0], [0], [1], [0, 0, 1, 1], [], []>} : vector<8x16xbf16>, vector<16x512xbf16>, vector<8x512xf32> -> vector<8x512xf32>
    %c0_5 = arith.constant 0 : index
    %c0_6 = arith.constant 0 : index
    %5 = vector.load %arg4[%c0_5, %c0_6] : memref<8x1xf32, #tpu.memory_space<vmem>>, vector<8x1xf32>
    %6 = vector.broadcast %5 : vector<8x1xf32> to vector<8x512xf32>
    %7 = arith.addf %4, %6 : vector<8x512xf32>
    %cst_7 = arith.constant 0.000000e+00 : f32
    %8 = vector.broadcast %cst_7 : f32 to vector<8x512xf32>
    %9 = arith.maximumf %7, %8 : vector<8x512xf32>
    %c0_8 = arith.constant 0 : index
    %c0_9 = arith.constant 0 : index
    %c0_10 = arith.constant 0 : index
    %10 = vector.load %arg5[%c0_8, %c0_9, %c0_10] : memref<1x8x512xf32, #tpu.memory_space<vmem>>, vector<1x8x512xf32>
    %11 = vector.shape_cast %10 : vector<1x8x512xf32> to vector<8x512xf32>
    %12 = vector.shape_cast %9 : vector<8x512xf32> to vector<1x8x512xf32>
    tpu.vector_store %arg5[%c0_8, %c0_9, %c0_10], %12 {strides = array<i32>} : memref<1x8x512xf32, #tpu.memory_space<vmem>>, vector<1x8x512xf32>,
    %cst_11 = arith.constant dense<0.000000e+00> : vector<8xf32>
    %13 = vector.multi_reduction <add>, %9, %cst_11 [1] : vector<8x512xf32> to vector<8xf32>
    %14 = vector.shape_cast %13 : vector<8xf32> to vector<8x1xf32>
    %c0_12 = arith.constant 0 : index
    %c0_13 = arith.constant 0 : index
    %c0_14 = arith.constant 0 : index
    %c0_15 = arith.constant 0 : index
    %15 = vector.load %arg6[%c0_12, %c0_13, %c0_14, %c0_15] : memref<1x1x8x2xf32, #tpu.memory_space<vmem>>, vector<1x1x8x1xf32>
    %16 = vector.shape_cast %15 : vector<1x1x8x1xf32> to vector<8x1xf32>
    %17 = vector.shape_cast %14 : vector<8x1xf32> to vector<1x1x8x1xf32>
    tpu.vector_store %arg6[%c0_12, %c0_13, %c0_14, %c0_15], %17 {strides = array<i32>} : memref<1x1x8x2xf32, #tpu.memory_space<vmem>>, vector<1x1x8x1xf32>,
    %18 = arith.mulf %9, %9 : vector<8x512xf32>
    %cst_16 = arith.constant dense<0.000000e+00> : vector<8xf32>
    %19 = vector.multi_reduction <add>, %18, %cst_16 [1] : vector<8x512xf32> to vector<8xf32>
    %20 = vector.shape_cast %19 : vector<8xf32> to vector<8x1xf32>
    %c0_17 = arith.constant 0 : index
    %c0_18 = arith.constant 0 : index
    %c0_19 = arith.constant 0 : index
    %c1 = arith.constant 1 : index
    %21 = vector.load %arg6[%c0_17, %c0_18, %c0_19, %c1] : memref<1x1x8x2xf32, #tpu.memory_space<vmem>>, vector<1x1x8x1xf32>
    %22 = vector.shape_cast %21 : vector<1x1x8x1xf32> to vector<8x1xf32>
    %23 = vector.shape_cast %20 : vector<8x1xf32> to vector<1x1x8x1xf32>
    tpu.vector_store %arg6[%c0_17, %c0_18, %c0_19, %c1], %23 {strides = array<i32>} : memref<1x1x8x2xf32, #tpu.memory_space<vmem>>, vector<1x1x8x1xf32>,
    return
  }
  func.func @transform_0(%arg0: i32, %arg1: i32) -> (i32, i32, i32) {
    %c0_i32 = arith.constant 0 : i32
    %c0_i32_0 = arith.constant 0 : i32
    return %arg0, %c0_i32, %arg1 : i32, i32, i32
  }
  func.func @transform_1(%arg0: i32, %arg1: i32) -> (i32, i32, i32) {
    %c0_i32 = arith.constant 0 : i32
    %c0_i32_0 = arith.constant 0 : i32
    %c0_i32_1 = arith.constant 0 : i32
    return %arg0, %c0_i32, %c0_i32_0 : i32, i32, i32
  }
  func.func @transform_2(%arg0: i32, %arg1: i32) -> (i32, i32) {
    %c0_i32 = arith.constant 0 : i32
    %c0_i32_0 = arith.constant 0 : i32
    %c0_i32_1 = arith.constant 0 : i32
    return %c0_i32, %c0_i32_0 : i32, i32
  }
  func.func @transform_3(%arg0: i32, %arg1: i32) -> (i32, i32, i32) {
    %c0_i32 = arith.constant 0 : i32
    %c0_i32_0 = arith.constant 0 : i32
    return %arg0, %c0_i32, %arg1 : i32, i32, i32
  }
  func.func @transform_4(%arg0: i32, %arg1: i32) -> (i32, i32, i32, i32) {
    %c0_i32 = arith.constant 0 : i32
    %c0_i32_0 = arith.constant 0 : i32
    %c0_i32_1 = arith.constant 0 : i32
    return %arg0, %arg1, %c0_i32, %c0_i32_0 : i32, i32, i32, i32
  }
}

module attributes {stable_mosaic.version = 11 : i64} {
  func.func @_bn_affine_kernel(%arg0: i32, %arg1: i32, %arg2: memref<1x8x512xf32, #tpu.memory_space<vmem>>, %arg3: memref<8x1xf32, #tpu.memory_space<vmem>>, %arg4: memref<8x1xf32, #tpu.memory_space<vmem>>, %arg5: memref<1x8x512xf32, #tpu.memory_space<vmem>>) attributes {dimension_semantics = [#tpu.dimension_semantics<parallel>, #tpu.dimension_semantics<parallel>], iteration_bounds = array<i64: 4, 1>, scalar_prefetch = 0 : i64, scratch_operands = 0 : i64, tpu.core_type = #tpu.core_type<tc>, window_params = [{transform_indices = @transform_0, window_bounds = array<i64: 1, 8, 512>}, {pipeline_mode = #tpu.pipeline_mode<synchronous>, transform_indices = @transform_1, window_bounds = array<i64: 8, 1>}, {pipeline_mode = #tpu.pipeline_mode<synchronous>, transform_indices = @transform_2, window_bounds = array<i64: 8, 1>}, {transform_indices = @transform_3, window_bounds = array<i64: 1, 8, 512>}]} {
    %c0 = arith.constant 0 : index
    %c0_0 = arith.constant 0 : index
    %c0_1 = arith.constant 0 : index
    %0 = vector.load %arg2[%c0, %c0_0, %c0_1] : memref<1x8x512xf32, #tpu.memory_space<vmem>>, vector<1x8x512xf32>
    %1 = vector.shape_cast %0 : vector<1x8x512xf32> to vector<8x512xf32>
    %c0_2 = arith.constant 0 : index
    %c0_3 = arith.constant 0 : index
    %2 = vector.load %arg3[%c0_2, %c0_3] : memref<8x1xf32, #tpu.memory_space<vmem>>, vector<8x1xf32>
    %3 = vector.broadcast %2 : vector<8x1xf32> to vector<8x512xf32>
    %4 = arith.mulf %1, %3 : vector<8x512xf32>
    %c0_4 = arith.constant 0 : index
    %c0_5 = arith.constant 0 : index
    %5 = vector.load %arg4[%c0_4, %c0_5] : memref<8x1xf32, #tpu.memory_space<vmem>>, vector<8x1xf32>
    %6 = vector.broadcast %5 : vector<8x1xf32> to vector<8x512xf32>
    %7 = arith.addf %4, %6 : vector<8x512xf32>
    %c0_6 = arith.constant 0 : index
    %c0_7 = arith.constant 0 : index
    %c0_8 = arith.constant 0 : index
    %8 = vector.load %arg5[%c0_6, %c0_7, %c0_8] : memref<1x8x512xf32, #tpu.memory_space<vmem>>, vector<1x8x512xf32>
    %9 = vector.shape_cast %8 : vector<1x8x512xf32> to vector<8x512xf32>
    %10 = vector.shape_cast %7 : vector<8x512xf32> to vector<1x8x512xf32>
    tpu.vector_store %arg5[%c0_6, %c0_7, %c0_8], %10 {strides = array<i32>} : memref<1x8x512xf32, #tpu.memory_space<vmem>>, vector<1x8x512xf32>,
    return
  }
  func.func @transform_0(%arg0: i32, %arg1: i32) -> (i32, i32, i32) {
    %c0_i32 = arith.constant 0 : i32
    %c0_i32_0 = arith.constant 0 : i32
    return %arg0, %c0_i32, %arg1 : i32, i32, i32
  }
  func.func @transform_1(%arg0: i32, %arg1: i32) -> (i32, i32) {
    %c0_i32 = arith.constant 0 : i32
    %c0_i32_0 = arith.constant 0 : i32
    %c0_i32_1 = arith.constant 0 : i32
    return %c0_i32, %c0_i32_0 : i32, i32
  }
  func.func @transform_2(%arg0: i32, %arg1: i32) -> (i32, i32) {
    %c0_i32 = arith.constant 0 : i32
    %c0_i32_0 = arith.constant 0 : i32
    %c0_i32_1 = arith.constant 0 : i32
    return %c0_i32, %c0_i32_0 : i32, i32
  }
  func.func @transform_3(%arg0: i32, %arg1: i32) -> (i32, i32, i32) {
    %c0_i32 = arith.constant 0 : i32
    %c0_i32_0 = arith.constant 0 : i32
    return %arg0, %c0_i32, %arg1 : i32, i32, i32
  }
}

</mosaic_0001>

<bundles_post_ra>
// kernel: upsample_block_forward.3
= control target key start
LH: loop header
LB: loop body
LE: loop exit
PB: predicated region body
PF: predicated region fallthrough
CT: control target
= control target key end

     0   :  { %s409_s12 = smov 0   ;;  %s411_s13 = smov 0   ;;  %s448_s0 = inlined_call_operand.vmem [shape: f32[4,8,512], index: 0, kind: input, shape index: {}]   ;;  %s449_s1 = inlined_call_operand.vmem [shape: f32[8,1], index: 1, kind: input, shape index: {}]   ;;  %s450_s2 = inlined_call_operand.vmem [shape: f32[8,1], index: 2, kind: input, shape index: {}]   ;;  %s451_s3 = inlined_call_operand.vmem [shape: f32[4,8,512], index: 3, kind: output, shape index: {}]  }
   0x1   :  { %s413_s14 = smov 0  }
   0x2 LB: > { %s25_s15 = sadd.s32 1, %s382_s13  ;;  %p329_p0 = scmp.ge.s32.totalorder %s386_s14, 1  ;;  %s386_s14 = sphi %s413_s14, %s13_s14   ;;  %s382_s13 = sphi %s411_s13, %s453_s13   ;;  %s378_s12 = sphi %s409_s12, %s452_s12  }
   0x3   : > { %p27_p1 = scmp.ge.s32.totalorder %s25_s15, 4  ;;  %p158_p2 = scmp.lt.s32.totalorder %s386_s14, 5 }
   0x5   : > { %s455_s15 = smov (%p27_p1, %s25_s15), 0  ;;  %p159_p3 = pnand %p329_p0, %p158_p2 }
   0x6   : > { %p191_p4 = scmp.lt.s32.totalorder (!%p159_p3), %s378_s12, 3 }
   0x7   : > { %162 = sbr.rel (%p159_p3) target bundleno = 143 (0x8f), region = 32 }
   0xc   : > { %v214_v0 = vld [vmem:[%s449_s1] sm:$0xff]  ;;  %v388_v1 = vmov 0   ;;  %s457_s12 = smov (!%p191_p4, %s378_s12), 3 }
   0xd   : > { %363 = vset.pattern.permute.xlu0 %v388_v1  ;;  %v224_v2 = vld [vmem:[%s450_s2] sm:$0xff]  ;;  %s336_s20 = sshll.u32 %s457_s12, 5 }
   0xe   : > { %217 = vperm.xlu0 %363, %v214_v0   ;;  %s198_s23 = scalar_lea.vmem %s448_s0, %s336_s20  ;;  %s208_s26 = scalar_lea.vmem %s451_s3, %s336_s20 }
   0xf   : > { %v210_v4 = vld [vmem:[%s198_s23] sm:$0xff]  ;;  %v211_v5 = vld [vmem:[%s198_s23 + $0x8] sm:$0xff]  ;;  %v212_v6 = vld [vmem:[%s198_s23 + $0x10] sm:$0xff] }
  0x10   : > { %v213_v7 = vld [vmem:[%s198_s23 + $0x18] sm:$0xff] }
  0x16   : > { %227 = vperm.xlu0 %363, %v224_v2  }
  0x80   : > { %v218_v3 = vpop.permute.xlu0 %217 }
  0x81   : > { %v220_v8 = vmul.f32 %v218_v3, %v210_v4  ;;  %v221_v9 = vmul.f32 %v218_v3, %v211_v5  ;;  %v222_v10 = vmul.f32 %v218_v3, %v212_v6  ;;  %v223_v12 = vmul.f32 %v218_v3, %v213_v7 }
  0x88   : > { %v228_v11 = vpop.permute.xlu0 %227 }
  0x89   : > { %v230_v13 = vadd.f32 %v228_v11, %v220_v8  ;;  %v231_v14 = vadd.f32 %v228_v11, %v221_v9  ;;  %v232_v15 = vadd.f32 %v228_v11, %v222_v10  ;;  %v233_v16 = vadd.f32 %v228_v11, %v223_v12 }
  0x8b   : > { %234 = vst [vmem:[%s208_s26] sm:$0xff] %v230_v13 }
  0x8c   : > { %235 = vst [vmem:[%s208_s26 + $0x8] sm:$0xff] %v231_v14 }
  0x8d   : > { %236 = vst [vmem:[%s208_s26 + $0x10] sm:$0xff] %v232_v15 }
  0x8e   : > { %237 = vst [vmem:[%s208_s26 + $0x18] sm:$0xff] %v233_v16 }
  0x8f PF: > { %s13_s14 = sadd.s32 1, %s386_s14   ;;  %s452_s12 = smov %s382_s13 }
  0x90   : > { %p10_p5 = scmp.ge.s32.totalorder %s13_s14, 6   ;;  %s453_s13 = smov %s455_s15 }
  0x92   :  { %12 = sbr.rel (!%p10_p5) target bundleno = 2 (0x2), region = 62 }

// kernel: upsample_block_forward.2
= control target key start
LH: loop header
LB: loop body
LE: loop exit
PB: predicated region body
PF: predicated region fallthrough
CT: control target
= control target key end

     0   :  { %s642_s15 = smov 0   ;;  %s644_s16 = smov 0   ;;  %s693_s0 = inlined_call_operand.vmem [shape: bf16[4,16,512], index: 0, kind: input, shape index: {}]   ;;  %s694_s1 = inlined_call_operand.vmem [shape: bf16[4,8,16], index: 1, kind: input, shape index: {}]   ;;  %s695_s2 = inlined_call_operand.vmem [shape: f32[8,1], index: 2, kind: input, shape index: {}]   ;;  %s696_s3 = inlined_call_operand.vmem [shape: f32[4,8,512], index: 3, kind: output, shape index: {0}]   ;;  %s697_s4 = inlined_call_operand.vmem [shape: f32[4,1,8,2], index: 4, kind: output, shape index: {1}]  }
   0x1   :  { %s646_s17 = smov 0  }
   0x2 LB: > { %s27_s18 = sadd.s32 1, %s610_s16  ;;  %p531_p0 = scmp.ge.s32.totalorder %s614_s17, 1  ;;  %s614_s17 = sphi %s646_s17, %s15_s17   ;;  %s610_s16 = sphi %s644_s16, %s699_s16   ;;  %s606_s15 = sphi %s642_s15, %s698_s15  }
   0x3   : > { %p29_p1 = scmp.ge.s32.totalorder %s27_s18, 4  ;;  %p197_p2 = scmp.lt.s32.totalorder %s614_s17, 5 }
   0x5   : > { %s701_s18 = smov (%p29_p1, %s27_s18), 0  ;;  %p198_p3 = pnand %p531_p0, %p197_p2 }
   0x6   : > { %p243_p4 = scmp.lt.s32.totalorder (!%p198_p3), %s606_s15, 3 }
   0x7   : > { %201 = sbr.rel (%p198_p3) target bundleno = 281 (0x119), region = 32 }
   0xc   : > { %v279_v0 = vld [vmem:[%s695_s2] sm:$0xff]  ;;  %v616_v1 = vmov 0   ;;  %s703_s15 = smov (!%p243_p4, %s606_s15), 3  ;;  %vm305_vm0 = vcmask 130048   ;;  %vm374_vm1 = vcmask 7168   ;;  %vm385_vm2 = vcmask 15368  }
   0xd   : > { %591 = vset.pattern.permute.xlu0 %v616_v1  ;;  %s560_s21 = sshll.u32 %s703_s15, 5  ;;  %s534_s22 = sshll.u32 %s703_s15, 2 }
   0xe   : > { %282 = vperm.xlu0 %591, %v279_v0   ;;  %s250_s25 = scalar_lea.vmem %s693_s0, %s560_s21  ;;  %s255_s28 = scalar_lea.vmem %s694_s1, %s534_s22 }
   0xf   : > { %v540_v2 = vld [vmem:[%s250_s25] sm:$0xf]  ;;  %v564_v3 = vld [vmem:[%s250_s25 + $0xc] sm:$0xf0]  ;;  %v562_v4 = vld [vmem:[%s250_s25 + $0x4] sm:$0xf]  ;;  %s264_s5 = scalar_lea.vmem %s696_s3, %s560_s21 }
  0x10   : > { %v541_v5 = vor.u32 %v564_v3, %v540_v2  ;;  %v542_v6 = vld [vmem:[%s250_s25 + $0x10] sm:$0xf0]  ;;  %v548_v7 = vld [vmem:[%s250_s25 + $0x8] sm:$0xf]  ;;  %v565_v8 = vld [vmem:[%s250_s25 + $0x14] sm:$0xf0] }
  0x11   : > { %v545_v9 = vor.u32 %v562_v4, %v542_v6  ;;  %v549_v10 = vor.u32 %v565_v8, %v548_v7  ;;  %v563_v11 = vld [vmem:[%s250_s25 + $0xc] sm:$0xf]  ;;  %v550_v12 = vld [vmem:[%s250_s25 + $0x18] sm:$0xf0]  ;;  %v274_v14 = vld [vmem:[%s255_s28] sm:$0xf] }
  0x12   : > { %316 = vmatpush.bf16.msra.mxu0 %v541_v5  ;;  %v553_v13 = vor.u32 %v563_v11, %v550_v12  ;;  %s537_s6 = sshll.u32 %s703_s15, 3 }
  0x13   : > { %329 = vmatpush.bf16.msra.mxu1 %v545_v9  ;;  %342 = vmatpush.bf16.msra.mxu2 %v549_v10  ;;  %s272_s9 = scalar_lea.vmem %s697_s4, %s537_s6 }
  0x14   : > { %355 = vmatpush.bf16.msra.mxu3 %v553_v13 }
  0x15   : > { %554 = vmatmul.msk.bf16.vlgmr.msra.gmra.mxu0 %vm305_vm0, %v274_v14 }
  0x16   : > { %555 = vmatmul.msk.bf16.vlgmr.msra.gmra.mxu1 %vm305_vm0, %v274_v14  ;;  %556 = vmatmul.msk.bf16.vlgmr.msra.gmra.mxu2 %vm305_vm0, %v274_v14 }
  0x17   : > { %557 = vmatmul.msk.bf16.vlgmr.msra.gmra.mxu3 %vm305_vm0, %v274_v14 }
  0x80   : > { %v283_v15 = vpop.permute.xlu0 %282 }
  0x92   : > { %v318_v16 = vpop.f32.mrf.mxu0 }
  0x93   : > { %v331_v17 = vpop.f32.mrf.mxu1  ;;  %v319_v18 = vadd.f32 %v318_v16, %v283_v15 }
  0x94   : > { %v332_v19 = vadd.f32 %v331_v17, %v283_v15 }
  0x95   : > { %v361_v20 = vmax.f32 %v319_v18, 0.0 }
  0x96   : > { %v362_v21 = vmax.f32 %v332_v19, 0.0 }
  0x97   : > { %365 = vst [vmem:[%s264_s5] sm:$0xff] %v361_v20  ;;  %v376_v22 = vmul.f32 %v361_v20, %v361_v20 }
  0x98   : > { %366 = vst [vmem:[%s264_s5 + $0x8] sm:$0xff] %v362_v21  ;;  %v377_v23 = vmul.f32 %v362_v21, %v362_v21  ;;  %v369_v28 = vadd.f32 %v362_v21, %v361_v20 }
  0x99   : > { %v344_v24 = vpop.f32.mrf.mxu2 }
  0x9a   : > { %v345_v25 = vadd.f32 %v344_v24, %v283_v15  ;;  %v357_v26 = vpop.f32.mrf.mxu3  ;;  %v320_v27 = vpop.f32.mrf.mxu0  ;;  %v380_v32 = vadd.f32 %v377_v23, %v376_v22 }
  0x9b   : > { %v358_v29 = vadd.f32 %v357_v26, %v283_v15  ;;  %v333_v30 = vpop.f32.mrf.mxu1 }
  0x9c   : > { %v363_v31 = vmax.f32 %v345_v25, 0.0 }
  0x9d   : > { %v364_v33 = vmax.f32 %v358_v29, 0.0 }
  0x9e   : > { %367 = vst [vmem:[%s264_s5 + $0x10] sm:$0xff] %v363_v31  ;;  %v370_v34 = vadd.f32 %v369_v28, %v363_v31  ;;  %v378_v35 = vmul.f32 %v363_v31, %v363_v31 }
  0x9f   : > { %368 = vst [vmem:[%s264_s5 + $0x18] sm:$0xff] %v364_v33  ;;  %v379_v37 = vmul.f32 %v364_v33, %v364_v33 }
  0xa0   : > { %v371_v36 = vadd.f32 %v370_v34, %v364_v33  ;;  %v381_v38 = vadd.f32 %v380_v32, %v378_v35 }
  0xa1   : > { %v346_v39 = vpop.f32.mrf.mxu2 }
  0xa2   : > { %v359_v40 = vpop.f32.mrf.mxu3  ;;  %372 = vadd.xlane.f32.xlu0 %v371_v36  ;;  %v382_v41 = vadd.f32 %v381_v38, %v379_v37 }
  0xa4   : > { %383 = vadd.xlane.f32.xlu1 %v382_v41 }
 0x115   : > { %v373_v42 = vpop.xlane.xlu0 %372 }
 0x116   : > { %375 = vst.msk [vmem:[%s272_s9] sm:$0xff] %vm374_vm1, %v373_v42 }
 0x117   : > { %v384_v43 = vpop.xlane.xlu1 %383 }
 0x118   : > { %386 = vst.msk [vmem:[%s272_s9] sm:$0xff] %vm385_vm2, %v384_v43 }
 0x119 PF: > { %s15_s17 = sadd.s32 1, %s614_s17   ;;  %s698_s15 = smov %s610_s16 }
 0x11a   : > { %p12_p5 = scmp.ge.s32.totalorder %s15_s17, 6   ;;  %s699_s16 = smov %s701_s18 }
 0x11c   :  { %14 = sbr.rel (!%p12_p5) target bundleno = 2 (0x2), region = 77 }

</bundles_post_ra>
